<compile_context>
chip_gen: v5e
topology: v5e:2x2
jax: 0.10.0
libtpu: 0.0.40
codegen_flags: <defaults>
</compile_context>

<pallas_src>
import jax
import jax.numpy as jnp
from jax import lax
from jax.experimental import pallas as pl
from jax.experimental.pallas import tpu as pltpu

# ----------------------------- sizes -----------------------------
E = 8             # strain-rate features produced by erate_fn(t)
S = 24            # size of the ODE state y
D_IN = E + S      # concatenated input size (torch.Tensor(0) contributes 0 elements)
H = 32            # hidden width of the base InelasticModel (MLP)

LANE = 128        # TPU lane width: hidden dim zero-padded to this for lane-dense matmuls
M_TILE = 256      # rows per grid step for large batches (grid >= 2 at M=512 -> both v7x TCs)
SMALL_BATCH_MAX = 32   # tiny batches: plain-JAX fallback (review item #7)


def _round_up(x, n):
    return ((x + n - 1) // n) * n


# ------------------------- Pallas kernel -------------------------
def strain_rhs_kernel(t_ref, y_ref, w1e_ref, w1y_ref, b1_ref, w2_ref, b2_ref, out_ref):
    """One tile of the batched StrainBasedModel.forward.

    Per row m:
      erate = 0.01 * sin(k * t[m]), k = 1..E   (0.01 folded into w1e at pack time)
      inp   = concat(erate, <empty>, y[m])     (realized as a split matmul)
      out   = tanh(inp @ W1 + b1) @ W2 + b2
    erate is computed in compact (E, tile) layout (2 vregs of sin) and fed to the
    MXU through one small XLU transpose.  Output is stored at S lanes.
    """
    tile = t_ref.shape[1]
    t_row = t_ref[...]                                                   # (1, tile)
    k = (lax.broadcasted_iota(jnp.int32, (E, tile), 0) + 1).astype(jnp.float32)
    erate = jnp.sin(k * t_row)                                           # (E, tile): compact sin
    erate_t = erate.T                                                    # (tile, E): one small XLU transpose
    h = jnp.dot(erate_t, w1e_ref[...], preferred_element_type=jnp.float32)   # (tile, LANE)
    h = h + jnp.dot(y_ref[...], w1y_ref[...], preferred_element_type=jnp.float32)
    h = jnp.tanh(h + b1_ref[...])                                        # (tile, LANE)
    o = jnp.dot(h, w2_ref[...], preferred_element_type=jnp.float32)      # (tile, S)
    out_ref[...] = (o + b2_ref[...]).astype(out_ref.dtype)               # S-lane store (no 128-wide writeback)


def _strain_rhs_pallas(t_row, y, packed_params, tile):
    """t_row: (1, Mp), y: (Mp, S) with Mp a multiple of `tile`. Returns (Mp, S)."""
    w1e, w1y, b1, w2, b2 = packed_params
    mp = y.shape[0]
    grid = (mp // tile,)
    return pl.pallas_call(
        strain_rhs_kernel,
        out_shape=jax.ShapeDtypeStruct((mp, S), jnp.float32),
        grid=grid,
        in_specs=[
            pl.BlockSpec((1, tile), lambda i: (0, i)),      # t (lane-major row)
            pl.BlockSpec((tile, S), lambda i: (i, 0)),      # y
            pl.BlockSpec((E, LANE), lambda i: (0, 0)),      # 0.01 * W1[:E], hidden padded to 128
            pl.BlockSpec((S, LANE), lambda i: (0, 0)),      # W1[E:],        hidden padded to 128
            pl.BlockSpec((1, LANE), lambda i: (0, 0)),      # b1
            pl.BlockSpec((LANE, S), lambda i: (0, 0)),      # W2 (S output lanes)
            pl.BlockSpec((1, S), lambda i: (0, 0)),         # b2
        ],
        out_specs=pl.BlockSpec((tile, S), lambda i: (i, 0)),
        compiler_params=pltpu.CompilerParams(
            dimension_semantics=("parallel",)),             # batch tiles across both TCs on v7x
    )(t_row, y, w1e, w1y, b1, w2, b2)


# --------------------- synthetic submodules ----------------------
def erate_fn(t):
    """Strain-rate features 0.01 * sin(k * t), k = 1..E. t may be scalar or (M,)."""
    freqs = jnp.arange(1, E + 1, dtype=jnp.float32)
    return 0.01 * jnp.sin(jnp.asarray(t, jnp.float32)[..., None] * freqs)


def T_fn(t):
    # Stored by the PyTorch module but unused in forward (kept for fidelity).
    return 300.0 + 0.0 * jnp.asarray(t, jnp.float32)


def init_model_params(key):
    k1, k2, k3, k4 = jax.random.split(key, 4)
    w1 = 0.1 * jax.random.normal(k1, (D_IN, H), jnp.float32)
    b1 = 0.1 * jax.random.normal(k2, (H,), jnp.float32)
    w2 = 0.1 * jax.random.normal(k3, (H, S), jnp.float32)
    b2 = 0.1 * jax.random.normal(k4, (S,), jnp.float32)
    return w1, b1, w2, b2


def pack_params_for_kernel(params):
    """One-time packing: fold the 0.01 erate scale into W1[:E], pad hidden dim to 128
    lanes, keep the output side at S lanes.  Hoisted out of the hot path."""
    w1, b1, w2, b2 = params
    w1e = jnp.zeros((E, LANE), jnp.float32).at[:, :H].set(0.01 * w1[:E])   # scale folded (review #2)
    w1y = jnp.zeros((S, LANE), jnp.float32).at[:, :H].set(w1[E:])
    b1p = jnp.zeros((1, LANE), jnp.float32).at[0, :H].set(b1)
    w2p = jnp.zeros((LANE, S), jnp.float32).at[:H, :].set(w2)
    b2p = b2.reshape(1, S)
    return w1e, w1y, b1p, w2p, b2p


# -------------------- StrainBasedModel.forward -------------------
def _small_batch_forward(ts, ys, packed_params):
    """Tiny batches (review #7): a ~25 KFLOP evaluation is pallas_call-launch bound,
    so evaluate in plain JAX using the same packed weights (identical math)."""
    w1e, w1y, b1, w2, b2 = packed_params
    hp = jax.lax.Precision.HIGHEST
    k = jnp.arange(1, E + 1, dtype=jnp.float32)
    erate = jnp.sin(ts[:, None] * k)                              # (m, E); 0.01 folded into w1e
    h = jnp.tanh(jnp.dot(erate, w1e, precision=hp)
                 + jnp.dot(ys, w1y, precision=hp) + b1)
    return jnp.dot(h, w2, precision=hp) + b2


def strain_based_model_forward_batched(ts, ys, packed_params):
    """Evaluate the strain-rate RHS at a batch of (t, y) pairs.

    ts: (M,) times, ys: (M, S) states  ->  (M, S) dy/dt.
    erate_fn, the (empty-tensor) concat, and the base model are fused into one
    pallas_call for all but tiny batches.
    """
    ts = jnp.asarray(ts, jnp.float32)
    ys = jnp.asarray(ys, jnp.float32)
    m = ts.shape[0]
    if m <= SMALL_BATCH_MAX:
        return _small_batch_forward(ts, ys, packed_params)
    # Tile selection: mid-size batches collapse into one grid step (tile multiple of
    # 128 keeps all layouts lane-aligned); large batches use M_TILE rows/step so the
    # grid is >= 2 at M >= 2*M_TILE (loads both v7x TensorCores).
    tile = min(M_TILE, _round_up(m, LANE))
    mp = _round_up(m, tile)
    t_row = ts.reshape(1, m)
    if mp != m:
        t_row = jnp.pad(t_row, ((0, 0), (0, mp - m)))
        ys = jnp.pad(ys, ((0, mp - m), (0, 0)))
    out = _strain_rhs_pallas(t_row, ys, packed_params, tile)      # (mp, S) — no trailing lane slice
    return out[:m] if mp != m else out


def strain_based_model_forward(t, y, packed_params):
    """Single-evaluation forward matching the PyTorch module signature (scalar t, y (S,))."""
    out = strain_based_model_forward_batched(
        jnp.asarray(t, jnp.float32)[None], y[None, :], packed_params)
    return out[0]


# ----------------------- pure-JAX reference ----------------------
def _reference_forward_batched(ts, ys, params):
    w1, b1, w2, b2 = params
    hp = jax.lax.Precision.HIGHEST
    empty = jnp.zeros((ts.shape[0], 0), jnp.float32)               # torch.Tensor(0) -> empty tensor
    inp = jnp.concatenate([erate_fn(ts), empty, ys], axis=-1)      # (M, D_IN)
    h = jnp.tanh(jnp.dot(inp, w1, precision=hp) + b1)
    return jnp.dot(h, w2, precision=hp) + b2


# ------------------------------ main ------------------------------
if __name__ == "__main__":
    key = jax.random.PRNGKey(0)
    k_params, k_t, k_y = jax.random.split(key, 3)

    params = init_model_params(k_params)
    packed = pack_params_for_kernel(params)

    # Batched (t, y) evaluations (e.g. many ODE stages / steps / trajectories).
    M = 512
    ts = jax.random.uniform(k_t, (M,), jnp.float32, 0.0, 1.0)
    ys = jax.random.normal(k_y, (M, S), jnp.float32)

    fwd = jax.jit(strain_based_model_forward_batched)
    dydt = fwd(ts, ys, packed)
    jax.block_until_ready(dydt)
    assert dydt.shape == (M, S) and dydt.dtype == jnp.float32

    # All-f32 path -> tolerance tightened from 1e-2 to 1e-4 (review correctness note).
    ref = _reference_forward_batched(ts, ys, params)
    assert jnp.allclose(dydt, ref, rtol=1e-4, atol=1e-4), float(jnp.max(jnp.abs(dydt - ref)))

    # Single-evaluation path (exact PyTorch forward signature); tiny batch -> JAX fallback.
    one = strain_based_model_forward(ts[0], ys[0], packed)
    jax.block_until_ready(one)
    assert one.shape == (S,)
    assert jnp.allclose(one, ref[0], rtol=1e-4, atol=1e-4)

    print("KERNEL_OK")
</pallas_src>

<mosaic_0001>
module attributes {stable_mosaic.version = 11 : i64} {
  func.func @strain_rhs_kernel(%arg0: i32, %arg1: memref<1x256xf32, #tpu.memory_space<vmem>>, %arg2: memref<256x24xf32, #tpu.memory_space<vmem>>, %arg3: memref<8x128xf32, #tpu.memory_space<vmem>>, %arg4: memref<24x128xf32, #tpu.memory_space<vmem>>, %arg5: memref<1x128xf32, #tpu.memory_space<vmem>>, %arg6: memref<128x24xf32, #tpu.memory_space<vmem>>, %arg7: memref<1x24xf32, #tpu.memory_space<vmem>>, %arg8: memref<256x24xf32, #tpu.memory_space<vmem>>) attributes {dimension_semantics = [#tpu.dimension_semantics<parallel>], iteration_bounds = array<i64: 2>, scalar_prefetch = 0 : i64, scratch_operands = 0 : i64, tpu.core_type = #tpu.core_type<tc>, window_params = [{transform_indices = @transform_0, window_bounds = array<i64: 1, 256>}, {transform_indices = @transform_1, window_bounds = array<i64: 256, 24>}, {pipeline_mode = #tpu.pipeline_mode<synchronous>, transform_indices = @transform_2, window_bounds = array<i64: 8, 128>}, {pipeline_mode = #tpu.pipeline_mode<synchronous>, transform_indices = @transform_3, window_bounds = array<i64: 24, 128>}, {pipeline_mode = #tpu.pipeline_mode<synchronous>, transform_indices = @transform_4, window_bounds = array<i64: 1, 128>}, {pipeline_mode = #tpu.pipeline_mode<synchronous>, transform_indices = @transform_5, window_bounds = array<i64: 128, 24>}, {pipeline_mode = #tpu.pipeline_mode<synchronous>, transform_indices = @transform_6, window_bounds = array<i64: 1, 24>}, {transform_indices = @transform_7, window_bounds = array<i64: 256, 24>}]} {
    %c0 = arith.constant 0 : index
    %c0_0 = arith.constant 0 : index
    %0 = vector.load %arg1[%c0, %c0_0] : memref<1x256xf32, #tpu.memory_space<vmem>>, vector<1x256xf32>
    %1 = tpu.iota {dimensions = array<i32: 0>} : vector<8x256xi32>
    %c1_i32 = arith.constant 1 : i32
    %2 = vector.broadcast %c1_i32 : i32 to vector<8x256xi32>
    %3 = arith.addi %1, %2 : vector<8x256xi32>
    %4 = arith.sitofp %3 : vector<8x256xi32> to vector<8x256xf32>
    %5 = vector.broadcast %0 : vector<1x256xf32> to vector<8x256xf32>
    %6 = arith.mulf %4, %5 : vector<8x256xf32>
    %7 = math.sin %6 : vector<8x256xf32>
    %8 = tpu.transpose %7, [1, 0] : vector<8x256xf32> -> vector<256x8xf32>
    %c0_1 = arith.constant 0 : index
    %c0_2 = arith.constant 0 : index
    %9 = vector.load %arg3[%c0_1, %c0_2] : memref<8x128xf32, #tpu.memory_space<vmem>>, vector<8x128xf32>
    %cst = arith.constant dense<0.000000e+00> : vector<256x128xf32>
    %10 = tpu.matmul %8, %9, %cst {dimension_numbers = #tpu.dot_dimension_numbers<[1], [0], [0], [1], [0, 0, 1, 1], [], []>} : vector<256x8xf32>, vector<8x128xf32>, vector<256x128xf32> -> vector<256x128xf32>
    %c0_3 = arith.constant 0 : index
    %c0_4 = arith.constant 0 : index
    %11 = vector.load %arg2[%c0_3, %c0_4] : memref<256x24xf32, #tpu.memory_space<vmem>>, vector<256x24xf32>
    %c0_5 = arith.constant 0 : index
    %c0_6 = arith.constant 0 : index
    %12 = vector.load %arg4[%c0_5, %c0_6] : memref<24x128xf32, #tpu.memory_space<vmem>>, vector<24x128xf32>
    %cst_7 = arith.constant dense<0.000000e+00> : vector<256x128xf32>
    %13 = tpu.matmul %11, %12, %cst_7 {dimension_numbers = #tpu.dot_dimension_numbers<[1], [0], [0], [1], [0, 0, 1, 1], [], []>} : vector<256x24xf32>, vector<24x128xf32>, vector<256x128xf32> -> vector<256x128xf32>
    %14 = arith.addf %10, %13 : vector<256x128xf32>
    %c0_8 = arith.constant 0 : index
    %c0_9 = arith.constant 0 : index
    %15 = vector.load %arg5[%c0_8, %c0_9] : memref<1x128xf32, #tpu.memory_space<vmem>>, vector<1x128xf32>
    %16 = vector.broadcast %15 : vector<1x128xf32> to vector<256x128xf32>
    %17 = arith.addf %14, %16 : vector<256x128xf32>
    %18 = math.tanh %17 : vector<256x128xf32>
    %c0_10 = arith.constant 0 : index
    %c0_11 = arith.constant 0 : index
    %19 = vector.load %arg6[%c0_10, %c0_11] : memref<128x24xf32, #tpu.memory_space<vmem>>, vector<128x24xf32>
    %cst_12 = arith.constant dense<0.000000e+00> : vector<256x24xf32>
    %20 = tpu.matmul %18, %19, %cst_12 {dimension_numbers = #tpu.dot_dimension_numbers<[1], [0], [0], [1], [0, 0, 1, 1], [], []>} : vector<256x128xf32>, vector<128x24xf32>, vector<256x24xf32> -> vector<256x24xf32>
    %c0_13 = arith.constant 0 : index
    %c0_14 = arith.constant 0 : index
    %21 = vector.load %arg7[%c0_13, %c0_14] : memref<1x24xf32, #tpu.memory_space<vmem>>, vector<1x24xf32>
    %22 = vector.broadcast %21 : vector<1x24xf32> to vector<256x24xf32>
    %23 = arith.addf %20, %22 : vector<256x24xf32>
    %c0_15 = arith.constant 0 : index
    %c0_16 = arith.constant 0 : index
    %24 = vector.load %arg8[%c0_15, %c0_16] : memref<256x24xf32, #tpu.memory_space<vmem>>, vector<256x24xf32>
    tpu.vector_store %arg8[%c0_15, %c0_16], %23 {strides = array<i32>} : memref<256x24xf32, #tpu.memory_space<vmem>>, vector<256x24xf32>,
    return
  }
  func.func @transform_0(%arg0: i32) -> (i32, i32) {
    %c0_i32 = arith.constant 0 : i32
    %c0_i32_0 = arith.constant 0 : i32
    return %c0_i32, %arg0 : i32, i32
  }
  func.func @transform_1(%arg0: i32) -> (i32, i32) {
    %c0_i32 = arith.constant 0 : i32
    %c0_i32_0 = arith.constant 0 : i32
    return %arg0, %c0_i32 : i32, i32
  }
  func.func @transform_2(%arg0: i32) -> (i32, i32) {
    %c0_i32 = arith.constant 0 : i32
    %c0_i32_0 = arith.constant 0 : i32
    %c0_i32_1 = arith.constant 0 : i32
    return %c0_i32, %c0_i32_0 : i32, i32
  }
  func.func @transform_3(%arg0: i32) -> (i32, i32) {
    %c0_i32 = arith.constant 0 : i32
    %c0_i32_0 = arith.constant 0 : i32
    %c0_i32_1 = arith.constant 0 : i32
    return %c0_i32, %c0_i32_0 : i32, i32
  }
  func.func @transform_4(%arg0: i32) -> (i32, i32) {
    %c0_i32 = arith.constant 0 : i32
    %c0_i32_0 = arith.constant 0 : i32
    %c0_i32_1 = arith.constant 0 : i32
    return %c0_i32, %c0_i32_0 : i32, i32
  }
  func.func @transform_5(%arg0: i32) -> (i32, i32) {
    %c0_i32 = arith.constant 0 : i32
    %c0_i32_0 = arith.constant 0 : i32
    %c0_i32_1 = arith.constant 0 : i32
    return %c0_i32, %c0_i32_0 : i32, i32
  }
  func.func @transform_6(%arg0: i32) -> (i32, i32) {
    %c0_i32 = arith.constant 0 : i32
    %c0_i32_0 = arith.constant 0 : i32
    %c0_i32_1 = arith.constant 0 : i32
    return %c0_i32, %c0_i32_0 : i32, i32
  }
  func.func @transform_7(%arg0: i32) -> (i32, i32) {
    %c0_i32 = arith.constant 0 : i32
    %c0_i32_0 = arith.constant 0 : i32
    return %arg0, %c0_i32 : i32, i32
  }
}

</mosaic_0001>

<bundles_post_ra>
// kernel: strain_based_model_forward_batched.1
= control target key start
LH: loop header
LB: loop body
LE: loop exit
PB: predicated region body
PF: predicated region fallthrough
CT: control target
= control target key end

     0   :  { %s1680_s24 = smov 0   ;;  %s2234_s0 = inlined_call_operand.vmem [shape: f32[1,512], index: 0, kind: input, shape index: {}]   ;;  %s2235_s1 = inlined_call_operand.vmem [shape: f32[512,24], index: 1, kind: input, shape index: {}]   ;;  %s2236_s2 = inlined_call_operand.vmem [shape: f32[8,128], index: 2, kind: input, shape index: {}]   ;;  %s2237_s3 = inlined_call_operand.vmem [shape: f32[24,128], index: 3, kind: input, shape index: {}]   ;;  %s2238_s4 = inlined_call_operand.vmem [shape: f32[1,128], index: 4, kind: input, shape index: {}]   ;;  %s2239_s5 = inlined_call_operand.vmem [shape: f32[128,24], index: 5, kind: input, shape index: {}]   ;;  %s2240_s6 = inlined_call_operand.vmem [shape: f32[1,24], index: 6, kind: input, shape index: {}]   ;;  %s2241_s7 = inlined_call_operand.vmem [shape: f32[512,24], index: 7, kind: output, shape index: {}]  }
   0x1 LB: > { %s1441_s25 = sadd.s32 4294967295, %s1631_s24   ;;  %p1445_p0 = scmp.ge.s32.totalorder %s1631_s24, 1  ;;  %s1631_s24 = sphi %s1680_s24, %s17_s24  }
   0x2   : > { %p248_p1 = scmp.lt.s32.totalorder %s1631_s24, 3 }
   0x4   : > { %p249_p2 = pnand %p1445_p0, %p248_p1 }
   0x5   : > { %s1446_s26 = sshll.u32 (!%p249_p2), %s1441_s25, 1  ;;  %s1447_s15 = sshll.u32 (!%p249_p2), %s1441_s25, 5 }
   0x6   : > { %252 = sbr.rel (%p249_p2) target bundleno = 808 (0x328), region = 48  ;;  %p285_p3 = scmp.lt.s32.totalorder (!%p249_p2), %s1446_s26, 3 }
   0x7   : > { %p290_p4 = scmp.lt.s32.totalorder (!%p249_p2), %s1447_s15, 63 }
   0xb   : > { %v302_v0 = vlaneseq  ;;  %s2245_s26 = smov (!%p285_p3, %s1446_s26), 3  ;;  %v1633_v18 = vmov 683565275   ;;  %v1634_v20 = vmov 2475754826   ;;  %s2247_s15 = smov (!%p290_p4, %s1447_s15), 63 }
   0xc   : > { %s287_s29 = scalar_lea.vmem %s2234_s0, %s2245_s26  ;;  %v1635_v22 = vmov 2131351028   ;;  %v1636_v24 = vmov 2102212464   ;;  %v1637_v26 = vmov 920167782  }
   0xd   : > { %v303_v1 = vshrl.u32 %v302_v0, 7  ;;  %v1695_v3 = vld [vmem:[%s287_s29] sm:$0x3]  ;;  %v1638_v32 = vmov 1326507024   ;;  %s1448_s16 = sshll.u32 %s2247_s15, 3 }
   0xe   : > { %v307_v5 = vperm.slane %v1695_v3, 0  ;;  %s1866_s19 = scalar_lea.vmem %s2235_s1, %s1448_s16  ;;  %s2107_s18 = scalar_lea.vmem %s2241_s7, %s1448_s16 }
   0xf   : > { %v1690_v2 = vadd.s32 1, %v303_v1 }
  0x11   : > { %v305_v4 = vcvt.s32.f32 %v1690_v2 }
  0x13   : > { %v1701_v6 = vmul.f32 %v307_v5, %v305_v4 }
  0x15   : > { %v316_v7 = vand.u32 2139095040, %v1701_v6  ;;  %v313_v9 = vand.u32 2147483647, %v1701_v6  ;;  %vm315_vm12 = vcmp.lt.s32.totalorder %v1701_v6, 0 }
  0x17   : > { %v317_v8 = vshrl.u32 %v316_v7, 23  ;;  %v320_v12 = vand.u32 8388607, %v313_v9  ;;  %vm314_vm13 = vcmp.le.f32.partialorder %v313_v9, 0.7853982 }
  0x19   : > { %v1451_v10 = vadd.s32 4294967169, %v317_v8  ;;  %v321_v15 = vor.u32 8388608, %v320_v12 }
  0x1b   : > { %v323_v11 = vadd.s32 1, %v1451_v10  ;;  %v1720_v34 = vshll.u32 %v321_v15, 8 }
  0x1d   : > { %vm324_vm0 = vcmp.gt.s32.totalorder %v323_v11, 0  ;;  %v362_v46 = vand.u32 65535, %v1720_v34  ;;  %v363_v47 = vshrl.u32 %v1720_v34, 16 }
  0x1e   : > { %v325_v13 = vsel %vm324_vm0, %v323_v11, 0  ;;  %v1639_v11 = vmov 0  }
  0x1f   : > { %v327_v14 = vand.u32 31, %v325_v13  ;;  %v1707_v16 = vshrl.u32 %v325_v13, 5 }
  0x21   : > { %v328_v17 = vsub.s32 32, %v327_v14  ;;  %v330_v19 = vshll.u32 %v1633_v18, %v327_v14  ;;  %v333_v21 = vshll.u32 %v1634_v20, %v327_v14  ;;  %v336_v23 = vshll.u32 %v1635_v22, %v327_v14 }
  0x22   : > { %v339_v25 = vshll.u32 %v1636_v24, %v327_v14  ;;  %v342_v27 = vshll.u32 %v1637_v26, %v327_v14  ;;  %vm345_vm1 = vcmp.lt.s32.totalorder %v1707_v16, 1  ;;  %vm348_vm2 = vcmp.lt.s32.totalorder %v1707_v16, 4 }
  0x23   : > { %v331_v28 = vshrl.u32 %v1634_v20, %v328_v17  ;;  %v334_v29 = vshrl.u32 %v1635_v22, %v328_v17  ;;  %v337_v30 = vshrl.u32 %v1636_v24, %v328_v17  ;;  %v340_v31 = vshrl.u32 %v1637_v26, %v328_v17 }
  0x24   : > { %v343_v33 = vshrl.u32 %v1638_v32, %v328_v17  ;;  %vm347_vm3 = vcmp.lt.s32.totalorder %v1707_v16, 3  ;;  %vm346_vm4 = vcmp.lt.s32.totalorder %v1707_v16, 2  ;;  %v329_v54 = vshrl.u32 %v1633_v18, %v328_v17 }
  0x25   : > { %v332_v35 = vor.u32 %v331_v28, %v330_v19  ;;  %v335_v36 = vor.u32 %v334_v29, %v333_v21  ;;  %v338_v37 = vor.u32 %v337_v30, %v336_v23  ;;  %v341_v38 = vor.u32 %v340_v31, %v339_v25 }
  0x26   : > { %v344_v39 = vor.u32 %v343_v33, %v342_v27 }
  0x27   : > { %v353_v40 = vsel %vm345_vm1, %v332_v35, %v335_v36  ;;  %v357_v41 = vsel %vm345_vm1, %v335_v36, %v338_v37  ;;  %v354_v42 = vsel %vm348_vm2, %v341_v38, 920167782  ;;  %v349_v7 = vsel %vm345_vm1, %v329_v54, %v332_v35 }
  0x28   : > { %v358_v43 = vsel %vm348_vm2, %v344_v39, 1326507024  ;;  %v355_v44 = vsel %vm347_vm3, %v338_v37, %v354_v42  ;;  %v350_v10 = vsel %vm348_vm2, %v338_v37, 2102212464 }
  0x29   : > { %v359_v45 = vsel %vm347_vm3, %v341_v38, %v358_v43  ;;  %v356_v48 = vsel %vm346_vm4, %v353_v40, %v355_v44  ;;  %v351_v25 = vsel %vm347_vm3, %v335_v36, %v350_v10 }
  0x2a   : > { %v360_v49 = vsel %vm346_vm4, %v357_v41, %v359_v45  ;;  %v386_v52 = vand.u32 65535, %v356_v48  ;;  %v387_v53 = vshrl.u32 %v356_v48, 16  ;;  %v352_v37 = vsel %vm346_vm4, %v349_v7, %v351_v25 }
  0x2b   : > { %v364_v50 = vand.u32 65535, %v360_v49  ;;  %v365_v51 = vshrl.u32 %v360_v49, 16  ;;  %v406_v41 = vmul.u32 %v1720_v34, %v352_v37 }
  0x2c   : > { %v388_v58 = vmul.u32 %v386_v52, %v362_v46  ;;  %v389_v59 = vmul.u32 %v387_v53, %v362_v46  ;;  %v390_v60 = vmul.u32 %v386_v52, %v363_v47  ;;  %v391_v0 = vmul.u32 %v387_v53, %v363_v47 }
  0x2d   : > { %v366_v55 = vmul.u32 %v364_v50, %v362_v46  ;;  %v367_v56 = vmul.u32 %v365_v51, %v362_v46  ;;  %v368_v57 = vmul.u32 %v364_v50, %v363_v47  ;;  %v369_v61 = vmul.u32 %v365_v51, %v363_v47 }
  0x2e   : > { %v392_v1 = vshll.u32 %v389_v59, 16  ;;  %v394_v5 = vshll.u32 %v390_v60, 16  ;;  %v393_v21 = vshrl.u32 %v389_v59, 16  ;;  %v395_v30 = vshrl.u32 %v390_v60, 16 }
  0x2f   : > { %v370_v62 = vshll.u32 %v367_v56, 16  ;;  %v372_v63 = vshll.u32 %v368_v57, 16  ;;  %v371_v14 = vshrl.u32 %v367_v56, 16  ;;  %v373_v27 = vshrl.u32 %v368_v57, 16 }
  0x30   : > { %vm396_vm6 = vc.u32 %v388_v58, %v392_v1  ;;  %v398_v13 = vadd.s32 %v392_v1, %v388_v58  ;;  %v308_v59 = vperm.slane %v1695_v3, 1 }
  0x31   : > { %vm374_vm5 = vc.u32 %v366_v55, %v370_v62  ;;  %v376_v8 = vadd.s32 %v370_v62, %v366_v55  ;;  %v397_v17 = vsel %vm396_vm6, 1, %v1639_v11  ;;  %vm456_vm6 = vweird.f32 %v1701_v6 }
  0x32   : > { %v375_v12 = vsel %vm374_vm5, 1, %v1639_v11  ;;  %v399_v23 = vadd.s32 %v397_v17, %v391_v0  ;;  %vm400_vm8 = vc.u32 %v398_v13, %v394_v5  ;;  %v402_v35 = vadd.s32 %v398_v13, %v394_v5 }
  0x33   : > { %v377_v15 = vadd.s32 %v375_v12, %v369_v61  ;;  %vm378_vm7 = vc.u32 %v376_v8, %v372_v63  ;;  %v401_v29 = vsel %vm400_vm8, 1, %v1639_v11  ;;  %v1760_v63 = vmul.f32 %v308_v59, %v305_v4 }
  0x34   : > { %v379_v19 = vsel %vm378_vm7, 1, %v1639_v11  ;;  %v403_v31 = vadd.s32 %v401_v29, %v399_v23 }
  0x35   : > { %v381_v28 = vadd.s32 %v379_v19, %v377_v15  ;;  %v471_v1 = vand.u32 2139095040, %v1760_v63  ;;  %v468_v2 = vand.u32 2147483647, %v1760_v63 }
  0x36   : > { %v404_v38 = vadd.s32 %v403_v31, %v393_v21 }
  0x37   : > { %v382_v33 = vadd.s32 %v381_v28, %v371_v14  ;;  %v472_v8 = vshrl.u32 %v471_v1, 23  ;;  %v475_v25 = vand.u32 8388607, %v468_v2 }
  0x38   : > { %v405_v40 = vadd.s32 %v404_v38, %v395_v30 }
  0x39   : > { %v383_v39 = vadd.s32 %v382_v33, %v373_v27  ;;  %v1454_v12 = vadd.s32 4294967169, %v472_v8 }
  0x3a   : > { %v409_v42 = vadd.s32 1, %v405_v40 }
  0x3b   : > { %vm408_vm9 = vc.u32 %v383_v39, %v402_v35  ;;  %v407_v16 = vadd.s32 %v402_v35, %v383_v39  ;;  %v478_v4 = vadd.s32 1, %v1454_v12 }
  0x3c   : > { %v410_v43 = vsel %vm408_vm9, %v409_v42, %v405_v40  ;;  %v476_v42 = vor.u32 8388608, %v475_v25 }
  0x3d   : > { %v411_v36 = vadd.s32 %v410_v43, %v406_v41  ;;  %vm479_vm14 = vcmp.gt.s32.totalorder %v478_v4, 0 }
  0x3e   : > { %v480_v23 = vsel %vm479_vm14, %v478_v4, 0  ;;  %vm470_vm14 = vcmp.lt.s32.totalorder %v1760_v63, 0 }
  0x3f   : > { %v412_v44 = vadd.s32 536870912, %v411_v36  ;;  %v482_v27 = vand.u32 31, %v480_v23  ;;  %v1770_v30 = vshrl.u32 %v480_v23, 5 }
  0x41   : > { %v413_v45 = vshrl.u32 %v412_v44, 30  ;;  %v483_v31 = vsub.s32 32, %v482_v27  ;;  %v485_v33 = vshll.u32 %v1633_v18, %v482_v27  ;;  %v488_v35 = vshll.u32 %v1634_v20, %v482_v27 }
  0x42   : > { %v491_v37 = vshll.u32 %v1635_v22, %v482_v27  ;;  %v494_v40 = vshll.u32 %v1636_v24, %v482_v27  ;;  %v497_v41 = vshll.u32 %v1637_v26, %v482_v27  ;;  %vm500_vm15 = vcmp.lt.s32.totalorder %v1770_v30, 1 }
  0x43   : > { %v414_v46 = vshll.u32 %v413_v45, 30  ;;  %v437_v62 = vsub.s32 4, %v413_v45  ;;  %v486_v43 = vshrl.u32 %v1634_v20, %v483_v31  ;;  %v492_v44 = vshrl.u32 %v1636_v24, %v483_v31 }
  0x44   : > { %vm502_vm1 = vcmp.lt.s32.totalorder %v1770_v30, 3  ;;  %vm503_vm2 = vcmp.lt.s32.totalorder %v1770_v30, 4  ;;  %vm501_vm3 = vcmp.lt.s32.totalorder %v1770_v30, 2 }
  0x45   : > { %v415_v47 = vsub.s32 %v411_v36, %v414_v46  ;;  %v438_v7 = vsel %vm315_vm12, %v437_v62, %v413_v45  ;;  %v489_v36 = vshrl.u32 %v1635_v22, %v483_v31  ;;  %v1787_v22 = vshll.u32 %v476_v42, 8 }
  0x46   : > { %v440_v3 = vsel %vm314_vm13, 0, %v438_v7 }
  0x47   : > { %vm416_vm10 = vcmp.lt.s32.totalorder %v415_v47, 0  ;;  %v417_v48 = vsub.s32 0, %v415_v47  ;;  %v457_v17 = vadd.s32 3, %v440_v3  ;;  %v518_v59 = vshrl.u32 %v1787_v22, 16 }
  0x48   : > { %v517_v62 = vand.u32 65535, %v1787_v22 }
  0x49   : > { %v418_v49 = vsel %vm416_vm10, %v417_v48, %v415_v47  ;;  %v458_v29 = vand.u32 3, %v457_v17  ;;  %v498_v48 = vshrl.u32 %v1638_v32, %v483_v31 }
  0x4a   : > { %v419_v50 = vclz %v418_v49  ;;  %v487_v49 = vor.u32 %v486_v43, %v485_v33 }
  0x4b   : > { %v499_v20 = vor.u32 %v498_v48, %v497_v41  ;;  %vm459_vm0 = vcmp.lt.s32.totalorder %v458_v29, 2  ;;  %vm463_vm4 = vcmp.eq.s32.totalorder %v458_v29, 2  ;;  %vm460_vm5 = vcmp.eq.s32.totalorder %v458_v29, 0 }
  0x4c   : > { %v1452_v51 = vadd.s32 4294967294, %v419_v50  ;;  %v1782_v50 = vor.u32 %v489_v36, %v488_v35 }
  0x4e   : > { %vm1453_vm11 = vcmp.lt.s32.totalorder %v1452_v51, 0  ;;  %v508_v32 = vsel %vm500_vm15, %v487_v49, %v1782_v50 }
  0x4f   : > { %v422_v52 = vsel %vm1453_vm11, 0, %v1452_v51  ;;  %v493_v51 = vor.u32 %v492_v44, %v491_v37 }
  0x50   : > { %v423_v53 = vsub.s32 32, %v422_v52  ;;  %v424_v54 = vshll.u32 %v415_v47, %v422_v52  ;;  %v427_v55 = vsub.s32 4294967266, %v422_v52  ;;  %v495_v47 = vshrl.u32 %v1637_v26, %v483_v31 }
  0x51   : > { %v505_v29 = vsel %vm503_vm2, %v493_v51, 2102212464 }
  0x52   : > { %v425_v34 = vshrl.u32 %v407_v16, %v423_v53  ;;  %v428_v56 = vadd.s32 127, %v427_v55  ;;  %v496_v53 = vor.u32 %v495_v47, %v494_v40  ;;  %v512_v55 = vsel %vm500_vm15, %v1782_v50, %v493_v51 }
  0x53   : > { %v506_v44 = vsel %vm502_vm1, %v1782_v50, %v505_v29 }
  0x54   : > { %v426_v57 = vor.u32 %v425_v34, %v424_v54  ;;  %v429_v58 = vshll.u32 %v428_v56, 23  ;;  %v509_v54 = vsel %vm503_vm2, %v496_v53, 920167782  ;;  %v513_v34 = vsel %vm503_vm2, %v499_v20, 1326507024 }
  0x56   : > { %v430_v60 = vor.u32 4788187, %v429_v58  ;;  %v433_v61 = vcvt.s32.f32 %v426_v57  ;;  %v510_v58 = vsel %vm502_vm1, %v493_v51, %v509_v54 }
  0x58   : > { %v431_v0 = vand.u32 2147483647, %v430_v60  ;;  %v511_v60 = vsel %vm501_vm3, %v508_v32, %v510_v58 }
  0x59   : > { %v541_v7 = vand.u32 65535, %v511_v60  ;;  %v542_v3 = vshrl.u32 %v511_v60, 16 }
  0x5a   : > { %v434_v5 = vmul.f32 %v433_v61, %v431_v0  ;;  %v514_v61 = vsel %vm502_vm1, %v496_v53, %v513_v34 }
  0x5b   : > { %v543_v23 = vmul.u32 %v541_v7, %v517_v62  ;;  %v544_v25 = vmul.u32 %v542_v3, %v517_v62 }
  0x5c   : > { %v435_v10 = vxor.u32 2147483648, %v434_v5 }
  0x5d   : > { %v547_v33 = vshll.u32 %v544_v25, 16  ;;  %v548_v43 = vshrl.u32 %v544_v25, 16 }
  0x5e   : > { %v436_v13 = vsel %vm315_vm12, %v435_v10, %v434_v5  ;;  %v515_v5 = vsel %vm501_vm3, %v512_v55, %v514_v61 }
  0x5f   : > { %v439_v14 = vsel %vm314_vm13, %v1701_v6, %v436_v13  ;;  %v519_v8 = vand.u32 65535, %v515_v5  ;;  %v520_v10 = vshrl.u32 %v515_v5, 16  ;;  %v484_v13 = vshrl.u32 %v1633_v18, %v483_v31 }
  0x60   : > { %v441_v15 = vmul.f32 %v439_v14, %v439_v14  ;;  %v546_v6 = vmul.u32 %v542_v3, %v518_v59  ;;  %vm551_vm8 = vc.u32 %v543_v23, %v547_v33 }
  0x61   : > { %v522_v17 = vmul.u32 %v520_v10, %v517_v62  ;;  %v524_v27 = vmul.u32 %v520_v10, %v518_v59  ;;  %v504_v37 = vsel %vm500_vm15, %v484_v13, %v487_v49  ;;  %v552_v41 = vsel %vm551_vm8, 1, %v1639_v11 }
  0x62   : > { %v442_v19 = vmul.f32 -0.001358992, %v441_v15  ;;  %v449_v21 = vmul.f32 -0.00019511016, %v441_v15  ;;  %v554_v36 = vadd.s32 %v552_v41, %v546_v6  ;;  %vm1830_vm15 = vcmp.le.f32.partialorder %v468_v2, 0.7853982 }
  0x63   : > { %v722_v2 = vld [vmem:[%s2237_s3 + $0x10] sm:$0xff]  ;;  %v687_v6 = vld [vmem:[%s2236_s2] sm:$0xff] }
  0x64   : > { %v443_v9 = vadd.f32 0.041655596, %v442_v19  ;;  %v450_v28 = vadd.f32 0.008332121, %v449_v21  ;;  %v523_v19 = vmul.u32 %v519_v8, %v518_v59  ;;  %833 = vmatpush.msra.mxu0 %v722_v2  ;;  %1523 = vmatpush.msra.mxu3 %v722_v2  ;;  %v704_v2 = vld [vmem:[%s1866_s19 + $0x80] sm:$0xff] }
  0x65   : > { %1045 = vmatpush.msra.mxu1 %v687_v6 }
  0x66   : > { %v444_v38 = vmul.f32 %v443_v9, %v441_v15  ;;  %v451_v39 = vmul.f32 %v450_v28, %v441_v15  ;;  %v525_v9 = vshll.u32 %v522_v17, 16  ;;  %v527_v28 = vshll.u32 %v523_v19, 16 }
  0x68   : > { %v445_v45 = vadd.f32 -0.4999988, %v444_v38  ;;  %v452_v46 = vadd.f32 -0.16666654, %v451_v39  ;;  %v553_v38 = vadd.s32 %v547_v33, %v543_v23  ;;  %v526_v39 = vshrl.u32 %v522_v17, 16 }
  0x6a   : > { %v446_v16 = vmul.f32 %v445_v45, %v441_v15  ;;  %v453_v52 = vmul.f32 %v452_v46, %v441_v15  ;;  %v521_v15 = vmul.u32 %v519_v8, %v517_v62  ;;  %v528_v45 = vshrl.u32 %v523_v19, 16 }
  0x6c   : > { %v447_v24 = vadd.f32 1.0, %v446_v16  ;;  %v454_v26 = vadd.f32 1.0, %v453_v52  ;;  %vm529_vm7 = vc.u32 %v521_v15, %v525_v9  ;;  %v531_v18 = vadd.s32 %v525_v9, %v521_v15 }
  0x6d   : > { %v530_v31 = vsel %vm529_vm7, 1, %v1639_v11  ;;  %v507_v52 = vsel %vm501_vm3, %v504_v37, %v506_v44  ;;  %vm611_vm3 = vweird.f32 %v1760_v63 }
  0x6e   : > { %v455_v56 = vmul.f32 %v454_v26, %v439_v14  ;;  %v464_v57 = vxor.u32 2147483648, %v447_v24  ;;  %v545_v14 = vmul.u32 %v541_v7, %v518_v59  ;;  %v532_v40 = vadd.s32 %v530_v31, %v524_v27 }
  0x6f   : > { %vm533_vm9 = vc.u32 %v531_v18, %v527_v28  ;;  %v561_v26 = vmul.u32 %v1787_v22, %v507_v52  ;;  %v721_v28 = vld [vmem:[%s2237_s3 + $0x8] sm:$0xff]  ;;  %v690_v52 = vld [vmem:[%s1866_s19 + $0x10] sm:$0xff] }
  0x70   : > { %v461_v0 = vxor.u32 2147483648, %v455_v56  ;;  %v465_v1 = vsel %vm463_vm4, %v464_v57, %v455_v56  ;;  %v549_v35 = vshll.u32 %v545_v14, 16  ;;  %v534_v42 = vsel %vm533_vm9, 1, %v1639_v11  ;;  %834 = vmatpush.msra.mxu0 %v721_v28  ;;  %1524 = vmatpush.msra.mxu3 %v721_v28  ;;  %v1976_v28 = vld [vmem:[%s2239_s5 + $0x20] sm:$0xff] }
  0x71   : > { %v536_v46 = vadd.s32 %v534_v42, %v532_v40  ;;  %v550_v48 = vshrl.u32 %v545_v14, 16  ;;  %vm723_vm4 = vcmask 195584  }
  0x72   : > { %v462_v12 = vsel %vm460_vm5, %v447_v24, %v461_v0  ;;  %vm555_vm10 = vc.u32 %v553_v38, %v549_v35  ;;  %v557_v16 = vadd.s32 %v553_v38, %v549_v35  ;;  %v720_v35 = vld [vmem:[%s2237_s3] sm:$0xff]  ;;  %vm933_vm5 = vcmask 64512  }
  0x73   : > { %v466_v4 = vsel %vm459_vm0, %v462_v12, %v465_v1  ;;  %v556_v47 = vsel %vm555_vm10, 1, %v1639_v11  ;;  %v537_v51 = vadd.s32 %v536_v46, %v526_v39  ;;  %835 = vmatpush.msra.mxu0 %v720_v35  ;;  %1525 = vmatpush.msra.mxu3 %v720_v35 }
  0x74   : > { %v467_v21 = vsel %vm456_vm6, nan, %v466_v4  ;;  %v558_v49 = vadd.s32 %v556_v47, %v554_v36  ;;  %v1941_v4 = vld [vmem:[%s2239_s5 + $0x48] sm:$0xff] }
  0x75   : > { %623 = vxpose.xlu0.b32.start.end [1/1] (short) %v467_v21, 128  ;;  %v538_v20 = vadd.s32 %v537_v51, %v528_v45  ;;  %1526 = vmatpush.msrb.mxu3 %v687_v6  ;;  %v1984_v6 = vld [vmem:[%s2239_s5 + $0x18] sm:$0xff] }
  0x76   : > { %v559_v53 = vadd.s32 %v558_v49, %v548_v43 }
  0x77   : > { %vm563_vm11 = vc.u32 %v538_v20, %v557_v16  ;;  %v562_v62 = vadd.s32 %v557_v16, %v538_v20  ;;  %v689_v16 = vld [vmem:[%s1866_s19 + $0x8] sm:$0xff] }
  0x78   : > { %v560_v24 = vadd.s32 %v559_v53, %v550_v48  ;;  %v691_v53 = vld [vmem:[%s1866_s19 + $0x18] sm:$0xff] }
  0x7a   : > { %v564_v32 = vadd.s32 1, %v560_v24 }
  0x7c   : > { %v565_v54 = vsel %vm563_vm11, %v564_v32, %v560_v24  ;;  %v692_v24 = vld [vmem:[%s1866_s19 + $0x20] sm:$0xff]  ;;  %v693_v32 = vld [vmem:[%s1866_s19 + $0x28] sm:$0xff] }
  0x7d   : > { %v566_v50 = vadd.s32 %v565_v54, %v561_v26 }
  0x7f   : > { %v567_v55 = vadd.s32 536870912, %v566_v50 }
  0x81   : > { %v568_v34 = vshrl.u32 %v567_v55, 30 }
  0x83   : > { %v569_v56 = vshll.u32 %v568_v34, 30  ;;  %v592_v33 = vsub.s32 4, %v568_v34 }
  0x85   : > { %v570_v11 = vsub.s32 %v566_v50, %v569_v56  ;;  %v593_v29 = vsel %vm470_vm14, %v592_v33, %v568_v34  ;;  %v694_v50 = vld [vmem:[%s1866_s19 + $0x30] sm:$0xff]  ;;  %v695_v34 = vld [vmem:[%s1866_s19 + $0x38] sm:$0xff] }
  0x86   : > { %v595_v39 = vsel %vm1830_vm15, 0, %v593_v29  ;;  %v1989_v33 = vld [vmem:[%s2239_s5 + $0x10] sm:$0xff]  ;;  %v705_v29 = vld [vmem:[%s1866_s19 + $0x88] sm:$0xff] }
  0x87   : > { %v572_v57 = vsub.s32 0, %v570_v11  ;;  %vm571_vm12 = vcmp.lt.s32.totalorder %v570_v11, 0  ;;  %v612_v42 = vadd.s32 3, %v595_v39 }
  0x89   : > { %v573_v58 = vsel %vm571_vm12, %v572_v57, %v570_v11  ;;  %v613_v44 = vand.u32 3, %v612_v42 }
  0x8a   : > { %v574_v59 = vclz %v573_v58  ;;  %v697_v58 = vld [vmem:[%s1866_s19 + $0x48] sm:$0xff] }
  0x8b   : > { %vm615_vm0 = vcmp.eq.s32.totalorder %v613_v44, 0  ;;  %vm618_vm1 = vcmp.eq.s32.totalorder %v613_v44, 2  ;;  %vm614_vm2 = vcmp.lt.s32.totalorder %v613_v44, 2  ;;  %v2019_v44 = vld [vmem:[%s2238_s4] ss:$0 sm:$0xff] }
  0x8c   : > { %v1455_v60 = vadd.s32 4294967294, %v574_v59 }
  0x8e   : > { %vm1456_vm13 = vcmp.lt.s32.totalorder %v1455_v60, 0 }
  0x8f   : > { %v577_v30 = vsel %vm1456_vm13, 0, %v1455_v60  ;;  %v698_v60 = vld [vmem:[%s1866_s19 + $0x50] sm:$0xff] }
  0x90   : > { %v582_v61 = vsub.s32 4294967266, %v577_v30  ;;  %v578_v0 = vsub.s32 32, %v577_v30  ;;  %v579_v22 = vshll.u32 %v570_v11, %v577_v30  ;;  %v696_v11 = vld [vmem:[%s1866_s19 + $0x40] sm:$0xff] }
  0x92   : > { %v583_v1 = vadd.s32 127, %v582_v61  ;;  %v580_v5 = vshrl.u32 %v562_v62, %v578_v0  ;;  %v699_v61 = vld [vmem:[%s1866_s19 + $0x58] sm:$0xff]  ;;  %v700_v0 = vld [vmem:[%s1866_s19 + $0x60] sm:$0xff] }
  0x94   : > { %v584_v7 = vshll.u32 %v583_v1, 23  ;;  %v581_v8 = vor.u32 %v580_v5, %v579_v22  ;;  %v701_v22 = vld [vmem:[%s1866_s19 + $0x68] sm:$0xff]  ;;  %v1226_v5 = vld [vmem:[%s2239_s5 + $0x78] sm:$0xff] }
  0x95   : > { %1231 = vmatpush.msra.mxu2 %v1226_v5 }
  0x96   : > { %v585_v10 = vor.u32 4788187, %v584_v7  ;;  %v588_v12 = vcvt.s32.f32 %v581_v8  ;;  %v1225_v7 = vld [vmem:[%s2239_s5 + $0x70] sm:$0xff]  ;;  %v1915_v8 = vld [vmem:[%s2239_s5 + $0x68] sm:$0xff] }
  0x97   : > { %1232 = vmatpush.msra.mxu2 %v1225_v7 }
  0x98   : > { %v586_v3 = vand.u32 2147483647, %v585_v10 }
  0x99   : > { %1233 = vmatpush.msra.mxu2 %v1915_v8 }
  0x9a   : > { %v589_v13 = vmul.f32 %v588_v12, %v586_v3  ;;  %v702_v3 = vld [vmem:[%s1866_s19 + $0x70] sm:$0xff]  ;;  %v1922_v12 = vld [vmem:[%s2239_s5 + $0x60] sm:$0xff] }
  0x9b   : > { %1234 = vmatpush.msra.mxu2 %v1922_v12 }
  0x9c   : > { %v590_v14 = vxor.u32 2147483648, %v589_v13 }
  0x9e   : > { %v591_v15 = vsel %vm470_vm14, %v590_v14, %v589_v13  ;;  %v1929_v13 = vld [vmem:[%s2239_s5 + $0x58] sm:$0xff]  ;;  %v1935_v14 = vld [vmem:[%s2239_s5 + $0x50] sm:$0xff] }
  0x9f   : > { %v594_v17 = vsel %vm1830_vm15, %v1760_v63, %v591_v15  ;;  %v688_v63 = vld [vmem:[%s1866_s19] sm:$0xff]  ;;  %1235 = vmatpush.msra.mxu2 %v1929_v13 }
  0xa0   : > { %v596_v19 = vmul.f32 %v594_v17, %v594_v17  ;;  %1457 = vmatmul.msk.f32.vlgmr.msra.gmra.mxu0 %vm723_vm4, %v688_v63 }
  0xa1   : > { %1236 = vmatpush.msra.mxu2 %v1935_v14 }
  0xa2   : > { %v604_v21 = vmul.f32 -0.00019511016, %v596_v19  ;;  %v597_v23 = vmul.f32 -0.001358992, %v596_v19 }
  0xa3   : > { %1237 = vmatpush.msra.mxu2 %v1941_v4 }
  0xa4   : > { %v605_v25 = vadd.f32 0.008332121, %v604_v21  ;;  %v598_v27 = vadd.f32 0.041655596, %v597_v23  ;;  %v1956_v21 = vld [vmem:[%s2239_s5 + $0x38] sm:$0xff]  ;;  %v1962_v23 = vld [vmem:[%s2239_s5 + $0x30] sm:$0xff] }
  0xa6   : > { %v606_v9 = vmul.f32 %v605_v25, %v596_v19  ;;  %v599_v37 = vmul.f32 %v598_v27, %v596_v19  ;;  %v1969_v27 = vld [vmem:[%s2239_s5 + $0x28] sm:$0xff] }
  0xa8   : > { %v607_v18 = vadd.f32 -0.16666654, %v606_v9  ;;  %v600_v31 = vadd.f32 -0.4999988, %v599_v37  ;;  %1458 = vmatmul.msk.f32.gmra.mxu0 %vm723_vm4, %v689_v16  ;;  %v1996_v37 = vld [vmem:[%s2239_s5 + $0x8] sm:$0xff] }
  0xaa   : > { %v608_v38 = vmul.f32 %v607_v18, %v596_v19  ;;  %v601_v40 = vmul.f32 %v600_v31, %v596_v19  ;;  %v1949_v19 = vld [vmem:[%s2239_s5 + $0x40] sm:$0xff] }
  0xab   : > { %1238 = vmatpush.msra.mxu2 %v1949_v19  ;;  %v2003_v31 = vld [vmem:[%s2239_s5] sm:$0xff] }
  0xac   : > { %v609_v41 = vadd.f32 1.0, %v608_v38  ;;  %v602_v43 = vadd.f32 1.0, %v601_v40  ;;  %v706_v40 = vld [vmem:[%s1866_s19 + $0x90] sm:$0xff] }
  0xad   : > { %1239 = vmatpush.msra.mxu2 %v1956_v21 }
  0xae   : > { %v610_v36 = vmul.f32 %v609_v41, %v594_v17  ;;  %v619_v46 = vxor.u32 2147483648, %v602_v43  ;;  %v703_v17 = vld [vmem:[%s1866_s19 + $0x78] sm:$0xff] }
  0xaf   : > { %1240 = vmatpush.msra.mxu2 %v1962_v23 }
  0xb0   : > { %v616_v45 = vxor.u32 2147483648, %v610_v36  ;;  %v620_v48 = vsel %vm618_vm1, %v619_v46, %v610_v36  ;;  %1459 = vmatmul.msk.f32.gmra.mxu0 %vm723_vm4, %v690_v52  ;;  %v713_v36 = vld [vmem:[%s1866_s19 + $0xc8] sm:$0xff] }
  0xb1   : > { %1241 = vmatpush.msra.mxu2 %v1969_v27  ;;  %1482 = vmatmul.msk.f32.vlgmr.msra.gmra.mxu3 %vm723_vm4, %v713_v36 }
  0xb2   : > { %v617_v47 = vsel %vm615_vm0, %v602_v43, %v616_v45  ;;  %v707_v43 = vld [vmem:[%s1866_s19 + $0x98] sm:$0xff]  ;;  %1527 = vmatpush.msra.mxu3 %v1226_v5 }
  0xb3   : > { %v621_v49 = vsel %vm614_vm2, %v617_v47, %v620_v48  ;;  %1242 = vmatpush.msra.mxu2 %v1976_v28 }
  0xb4   : > { %v622_v51 = vsel %vm611_vm3, nan, %v621_v49  ;;  %1528 = vmatpush.msra.mxu3 %v1225_v7  ;;  %v708_v49 = vld [vmem:[%s1866_s19 + $0xa0] sm:$0xff] }
  0xb5   : > { %1243 = vmatpush.msra.mxu2 %v1984_v6 }
  0xb6   : > { %1529 = vmatpush.msra.mxu3 %v1915_v8 }
  0xb7   : > { %1244 = vmatpush.msra.mxu2 %v1989_v33 }
  0xb8   : > { %1460 = vmatmul.msk.f32.gmra.mxu0 %vm723_vm4, %v691_v53  ;;  %1530 = vmatpush.msra.mxu3 %v1922_v12  ;;  %v712_v12 = vld [vmem:[%s1866_s19 + $0xc0] sm:$0xff] }
  0xb9   : > { %1245 = vmatpush.msra.mxu2 %v1996_v37 }
  0xba   : > { %1531 = vmatpush.msra.mxu3 %v1929_v13  ;;  %v718_v13 = vld [vmem:[%s1866_s19 + $0xf0] sm:$0xff] }
  0xbb   : > { %1246 = vmatpush.msra.mxu2 %v2003_v31 }
  0xbc   : > { %1532 = vmatpush.msra.mxu3 %v1935_v14 }
  0xbe   : > { %1533 = vmatpush.msra.mxu3 %v1941_v4 }
  0xc0   : > { %1461 = vmatmul.msk.f32.gmra.mxu0 %vm723_vm4, %v692_v24  ;;  %v709_v24 = vld [vmem:[%s1866_s19 + $0xa8] sm:$0xff]  ;;  %1534 = vmatpush.msra.mxu3 %v1949_v19 }
  0xc2   : > { %1535 = vmatpush.msra.mxu3 %v1956_v21 }
  0xc4   : > { %1536 = vmatpush.msra.mxu3 %v1962_v23  ;;  %v719_v23 = vld [vmem:[%s1866_s19 + $0xf8] sm:$0xff] }
  0xc6   : > { %1537 = vmatpush.msra.mxu3 %v1969_v27 }
  0xc8   : > { %1462 = vmatmul.msk.f32.gmra.mxu0 %vm723_vm4, %v693_v32  ;;  %1538 = vmatpush.msra.mxu3 %v1976_v28 }
  0xca   : > { %1539 = vmatpush.msra.mxu3 %v1984_v6 }
  0xcc   : > { %1540 = vmatpush.msra.mxu3 %v1989_v33 }
  0xce   : > { %1541 = vmatpush.msra.mxu3 %v1996_v37 }
  0xd0   : > { %1463 = vmatmul.msk.f32.gmra.mxu0 %vm723_vm4, %v694_v50  ;;  %1542 = vmatpush.msra.mxu3 %v2003_v31 }
  0xd8   : > { %1464 = vmatmul.msk.f32.gmra.mxu0 %vm723_vm4, %v695_v34 }
  0xe0   : > { %1465 = vmatmul.msk.f32.gmra.mxu0 %vm723_vm4, %v696_v11  ;;  %v710_v11 = vld [vmem:[%s1866_s19 + $0xb0] sm:$0xff] }
  0xe8   : > { %1466 = vmatmul.msk.f32.gmra.mxu0 %vm723_vm4, %v697_v58 }
  0xf0   : > { %1467 = vmatmul.msk.f32.gmra.mxu0 %vm723_vm4, %v698_v60 }
  0xf5   : > { %655 = vxpose.xlu0.b32.start.end [1/1] (short) %v622_v51, 128  ;;  %v714_v51 = vld [vmem:[%s1866_s19 + $0xd0] sm:$0xff] }
  0xf6   : > { %1483 = vmatmul.msk.f32.gmra.mxu3 %vm723_vm4, %v714_v51 }
  0xf8   : > { %1468 = vmatmul.msk.f32.gmra.mxu0 %vm723_vm4, %v699_v61 }
 0x100   : > { %1469 = vmatmul.msk.f32.gmra.mxu0 %vm723_vm4, %v700_v0  ;;  %v711_v0 = vld [vmem:[%s1866_s19 + $0xb8] sm:$0xff] }
 0x108   : > { %1470 = vmatmul.msk.f32.gmra.mxu0 %vm723_vm4, %v701_v22 }
 0x110   : > { %1471 = vmatmul.msk.f32.gmra.mxu0 %vm723_vm4, %v702_v3 }
 0x118   : > { %1472 = vmatmul.msk.f32.gmra.mxu0 %vm723_vm4, %v703_v17 }
 0x119   : > { %v639_v20 = vpop.trf.xlu0 }
 0x11a   : > { %1489 = vmatmul.msk.f32.vlgmr.msra.gmra.mxu1 %vm933_vm5, %v639_v20 }
 0x11d   : > { %v837_v25 = vpop.f32.mrf.mxu0 }
 0x120   : > { %1473 = vmatmul.msk.f32.gmra.mxu0 %vm723_vm4, %v704_v2 }
 0x121   : > { %v640_v26 = vpop.trf.xlu0 }
 0x122   : > { %1490 = vmatmul.msk.f32.gmra.mxu1 %vm933_vm5, %v640_v26  ;;  %v715_v26 = vld [vmem:[%s1866_s19 + $0xd8] sm:$0xff] }
 0x123   : > { %1484 = vmatmul.msk.f32.gmra.mxu3 %vm723_vm4, %v715_v26 }
 0x125   : > { %v840_v35 = vpop.f32.mrf.mxu0 }
 0x128   : > { %1474 = vmatmul.msk.f32.gmra.mxu0 %vm723_vm4, %v705_v29 }
 0x129   : > { %v641_v54 = vpop.trf.xlu0 }
 0x12a   : > { %1491 = vmatmul.msk.f32.gmra.mxu1 %vm933_vm5, %v641_v54 }
 0x12d   : > { %v843_v38 = vpop.f32.mrf.mxu0 }
 0x130   : > { %1475 = vmatmul.msk.f32.gmra.mxu0 %vm723_vm4, %v706_v40 }
 0x131   : > { %v642_v55 = vpop.trf.xlu0 }
 0x132   : > { %1492 = vmatmul.msk.f32.gmra.mxu1 %vm933_vm5, %v642_v55 }
 0x135   : > { %v846_v41 = vpop.f32.mrf.mxu0 }
 0x138   : > { %1476 = vmatmul.msk.f32.gmra.mxu0 %vm723_vm4, %v707_v43 }
 0x139   : > { %v643_v56 = vpop.trf.xlu0 }
 0x13a   : > { %1493 = vmatmul.msk.f32.gmra.mxu1 %vm933_vm5, %v643_v56 }
 0x13d   : > { %v2021_v46 = vpop.f32.mrf.mxu0 }
 0x140   : > { %1477 = vmatmul.msk.f32.gmra.mxu0 %vm723_vm4, %v708_v49 }
 0x141   : > { %v644_v57 = vpop.trf.xlu0 }
 0x142   : > { %1494 = vmatmul.msk.f32.gmra.mxu1 %vm933_vm5, %v644_v57  ;;  %v716_v57 = vld [vmem:[%s1866_s19 + $0xe0] sm:$0xff] }
 0x143   : > { %1485 = vmatmul.msk.f32.gmra.mxu3 %vm723_vm4, %v716_v57 }
 0x145   : > { %v2032_v52 = vpop.f32.mrf.mxu0 }
 0x148   : > { %1478 = vmatmul.msk.f32.gmra.mxu0 %vm723_vm4, %v709_v24 }
 0x149   : > { %v645_v59 = vpop.trf.xlu0 }
 0x14a   : > { %1495 = vmatmul.msk.f32.gmra.mxu1 %vm933_vm5, %v645_v59 }
 0x14d   : > { %v855_v55 = vpop.f32.mrf.mxu0 }
 0x150   : > { %1479 = vmatmul.msk.f32.gmra.mxu0 %vm723_vm4, %v710_v11 }
 0x151   : > { %v646_v30 = vpop.trf.xlu0 }
 0x152   : > { %1496 = vmatmul.msk.f32.gmra.mxu1 %vm933_vm5, %v646_v30 }
 0x155   : > { %v858_v30 = vpop.f32.mrf.mxu0 }
 0x158   : > { %1480 = vmatmul.msk.f32.gmra.mxu0 %vm723_vm4, %v711_v0 }
 0x159   : > { %v647_v62 = vpop.trf.xlu0 }
 0x15a   : > { %1497 = vmatmul.msk.f32.gmra.mxu1 %vm933_vm5, %v647_v62 }
 0x15d   : > { %v861_v8 = vpop.f32.mrf.mxu0 }
 0x160   : > { %1481 = vmatmul.msk.f32.gmra.mxu0 %vm723_vm4, %v712_v12 }
 0x161   : > { %v648_v1 = vpop.trf.xlu0 }
 0x162   : > { %1498 = vmatmul.msk.f32.gmra.mxu1 %vm933_vm5, %v648_v1  ;;  %v717_v1 = vld [vmem:[%s1866_s19 + $0xe8] sm:$0xff] }
 0x163   : > { %1486 = vmatmul.msk.f32.gmra.mxu3 %vm723_vm4, %v717_v1 }
 0x165   : > { %v864_v17 = vpop.f32.mrf.mxu0 }
 0x169   : > { %v649_v10 = vpop.trf.xlu0 }
 0x16a   : > { %1499 = vmatmul.msk.f32.gmra.mxu1 %vm933_vm5, %v649_v10 }
 0x16b   : > { %1487 = vmatmul.msk.f32.gmra.mxu3 %vm723_vm4, %v718_v13 }
 0x16d   : > { %v867_v6 = vpop.f32.mrf.mxu0 }
 0x171   : > { %v650_v15 = vpop.trf.xlu0 }
 0x172   : > { %1500 = vmatmul.msk.f32.gmra.mxu1 %vm933_vm5, %v650_v15 }
 0x173   : > { %1488 = vmatmul.msk.f32.gmra.mxu3 %vm723_vm4, %v719_v23 }
 0x179   : > { %v651_v9 = vpop.trf.xlu0 }
 0x17a   : > { %1501 = vmatmul.msk.f32.gmra.mxu1 %vm933_vm5, %v651_v9 }
 0x181   : > { %v652_v18 = vpop.trf.xlu0 }
 0x182   : > { %1502 = vmatmul.msk.f32.gmra.mxu1 %vm933_vm5, %v652_v18 }
 0x189   : > { %v653_v39 = vpop.trf.xlu0 }
 0x18a   : > { %1503 = vmatmul.msk.f32.gmra.mxu1 %vm933_vm5, %v653_v39  ;;  %v870_v39 = vpop.f32.mrf.mxu0 }
 0x191   : > { %v654_v42 = vpop.trf.xlu0 }
 0x192   : > { %1504 = vmatmul.msk.f32.gmra.mxu1 %vm933_vm5, %v654_v42 }
 0x197   : > { %v1047_v45 = vpop.f32.mrf.mxu1 }
 0x198   : > { %v1048_v47 = vadd.f32 %v1047_v45, %v837_v25  ;;  %v873_v45 = vpop.f32.mrf.mxu0 }
 0x199   : > { %v671_v48 = vpop.trf.xlu0 }
 0x19a   : > { %v1147_v63 = vadd.f32 %v2019_v44, %v1048_v47  ;;  %1505 = vmatmul.msk.f32.gmra.mxu1 %vm933_vm5, %v671_v48 }
 0x19c   : > { %1561 = vtanh.f32 %v1147_v63 }
 0x19f   : > { %v1050_v16 = vpop.f32.mrf.mxu1 }
 0x1a0   : > { %v1051_v53 = vadd.f32 %v1050_v16, %v840_v35  ;;  %v876_v16 = vpop.f32.mrf.mxu0 }
 0x1a1   : > { %v672_v20 = vpop.trf.xlu0 }
 0x1a2   : > { %v1562_v32 = vpop.eup %1561  ;;  %v1148_v54 = vadd.f32 %v2019_v44, %v1051_v53  ;;  %1506 = vmatmul.msk.f32.gmra.mxu1 %vm933_vm5, %v672_v20 }
 0x1a3   : > { %1247 = vmatmul.f32.vlgmr.msra.gmra.mxu2 %v1562_v32 }
 0x1a4   : > { %1563 = vtanh.f32 %v1148_v54 }
 0x1a7   : > { %v1053_v50 = vpop.f32.mrf.mxu1 }
 0x1a8   : > { %v1054_v34 = vadd.f32 %v1053_v50, %v843_v38  ;;  %v879_v50 = vpop.f32.mrf.mxu0 }
 0x1a9   : > { %v673_v56 = vpop.trf.xlu0 }
 0x1aa   : > { %v1564_v58 = vpop.eup %1563  ;;  %v1149_v59 = vadd.f32 %v2019_v44, %v1054_v34  ;;  %1507 = vmatmul.msk.f32.gmra.mxu1 %vm933_vm5, %v673_v56 }
 0x1ab   : > { %1250 = vmatmul.f32.gmra.mxu2 %v1564_v58 }
 0x1ac   : > { %1565 = vtanh.f32 %v1149_v59 }
 0x1af   : > { %v1056_v60 = vpop.f32.mrf.mxu1 }
 0x1b0   : > { %v1057_v61 = vadd.f32 %v1056_v60, %v846_v41  ;;  %v882_v60 = vpop.f32.mrf.mxu0 }
 0x1b1   : > { %v674_v62 = vpop.trf.xlu0 }
 0x1b2   : > { %v1566_v22 = vpop.eup %1565  ;;  %v1150_v5 = vadd.f32 %v2019_v44, %v1057_v61  ;;  %1508 = vmatmul.msk.f32.gmra.mxu1 %vm933_vm5, %v674_v62 }
 0x1b3   : > { %1253 = vmatmul.f32.gmra.mxu2 %v1566_v22 }
 0x1b4   : > { %1567 = vtanh.f32 %v1150_v5 }
 0x1b7   : > { %v1059_v7 = vpop.f32.mrf.mxu1 }
 0x1b8   : > { %v1060_v10 = vadd.f32 %v1059_v7, %v2021_v46  ;;  %v885_v22 = vpop.f32.mrf.mxu0 }
 0x1b9   : > { %v675_v3 = vpop.trf.xlu0 }
 0x1ba   : > { %v1568_v14 = vpop.eup %1567  ;;  %v1151_v4 = vadd.f32 %v2019_v44, %v1060_v10  ;;  %1509 = vmatmul.msk.f32.gmra.mxu1 %vm933_vm5, %v675_v3 }
 0x1bb   : > { %1256 = vmatmul.f32.gmra.mxu2 %v1568_v14 }
 0x1bc   : > { %1569 = vtanh.f32 %v1151_v4 }
 0x1bf   : > { %v1062_v15 = vpop.f32.mrf.mxu1 }
 0x1c0   : > { %v1063_v19 = vadd.f32 %v1062_v15, %v2032_v52  ;;  %v888_v13 = vpop.f32.mrf.mxu0 }
 0x1c1   : > { %v676_v21 = vpop.trf.xlu0 }
 0x1c2   : > { %v1570_v25 = vpop.eup %1569  ;;  %v1152_v27 = vadd.f32 %v2019_v44, %v1063_v19  ;;  %1510 = vmatmul.msk.f32.gmra.mxu1 %vm933_vm5, %v676_v21 }
 0x1c3   : > { %1259 = vmatmul.f32.gmra.mxu2 %v1570_v25 }
 0x1c4   : > { %1571 = vtanh.f32 %v1152_v27 }
 0x1c7   : > { %v1065_v9 = vpop.f32.mrf.mxu1 }
 0x1c8   : > { %v1066_v2 = vadd.f32 %v1065_v9, %v855_v55  ;;  %v891_v23 = vpop.f32.mrf.mxu0 }
 0x1c9   : > { %v677_v28 = vpop.trf.xlu0 }
 0x1ca   : > { %v1572_v33 = vpop.eup %1571  ;;  %v1153_v35 = vadd.f32 %v2019_v44, %v1066_v2  ;;  %1511 = vmatmul.msk.f32.gmra.mxu1 %vm933_vm5, %v677_v28 }
 0x1cb   : > { %1262 = vmatmul.f32.gmra.mxu2 %v1572_v33  ;;  %v2100_v33 = vld [vmem:[%s2240_s6] ss:$0 sm:$0xff] }
 0x1cc   : > { %1573 = vtanh.f32 %v1153_v35 }
 0x1cf   : > { %v1068_v37 = vpop.f32.mrf.mxu1 }
 0x1d0   : > { %v1069_v18 = vadd.f32 %v1068_v37, %v858_v30  ;;  %v894_v35 = vpop.f32.mrf.mxu0 }
 0x1d1   : > { %v678_v29 = vpop.trf.xlu0 }
 0x1d2   : > { %v1574_v31 = vpop.eup %1573  ;;  %v1154_v38 = vadd.f32 %v2019_v44, %v1069_v18  ;;  %1512 = vmatmul.msk.f32.gmra.mxu1 %vm933_vm5, %v678_v29 }
 0x1d3   : > { %1265 = vmatmul.f32.gmra.mxu2 %v1574_v31  ;;  %v2110_v31 = vpop.f32.mrf.mxu3 }
 0x1d4   : > { %1575 = vtanh.f32 %v1154_v38 }
 0x1d7   : > { %v1071_v40 = vpop.f32.mrf.mxu1 }
 0x1d8   : > { %v1072_v41 = vadd.f32 %v1071_v40, %v861_v8 }
 0x1d9   : > { %v679_v42 = vpop.trf.xlu0 }
 0x1da   : > { %v1576_v43 = vpop.eup %1575  ;;  %v1155_v36 = vadd.f32 %v2019_v44, %v1072_v41  ;;  %1513 = vmatmul.msk.f32.gmra.mxu1 %vm933_vm5, %v679_v42  ;;  %v897_v41 = vpop.f32.mrf.mxu0 }
 0x1db   : > { %1268 = vmatmul.f32.gmra.mxu2 %v1576_v43 }
 0x1dc   : > { %1577 = vtanh.f32 %v1155_v36 }
 0x1df   : > { %v1074_v46 = vpop.f32.mrf.mxu1 }
 0x1e0   : > { %v1075_v47 = vadd.f32 %v1074_v46, %v864_v17  ;;  %v2118_v46 = vpop.f32.mrf.mxu3 }
 0x1e1   : > { %v680_v48 = vpop.trf.xlu0 }
 0x1e2   : > { %v1578_v49 = vpop.eup %1577  ;;  %v1156_v51 = vadd.f32 %v2019_v44, %v1075_v47  ;;  %1514 = vmatmul.msk.f32.gmra.mxu1 %vm933_vm5, %v680_v48 }
 0x1e3   : > { %1271 = vmatmul.f32.gmra.mxu2 %v1578_v49 }
 0x1e4   : > { %1579 = vtanh.f32 %v1156_v51 }
 0x1e7   : > { %v1077_v63 = vpop.f32.mrf.mxu1 }
 0x1e8   : > { %v1078_v52 = vadd.f32 %v1077_v63, %v867_v6 }
 0x1e9   : > { %v681_v53 = vpop.trf.xlu0 }
 0x1ea   : > { %v1580_v20 = vpop.eup %1579  ;;  %v1157_v24 = vadd.f32 %v2019_v44, %v1078_v52  ;;  %1515 = vmatmul.msk.f32.vlgmr.msrb.gmra.mxu3 %vm933_vm5, %v681_v53 }
 0x1eb   : > { %1274 = vmatmul.f32.gmra.mxu2 %v1580_v20 }
 0x1ec   : > { %1581 = vtanh.f32 %v1157_v24  ;;  %v2125_v24 = vpop.f32.mrf.mxu3 }
 0x1ef   : > { %v1080_v26 = vpop.f32.mrf.mxu1 }
 0x1f0   : > { %v1081_v32 = vadd.f32 %v1080_v26, %v870_v39 }
 0x1f1   : > { %v682_v54 = vpop.trf.xlu0 }
 0x1f2   : > { %v1582_v55 = vpop.eup %1581  ;;  %v1158_v34 = vadd.f32 %v2019_v44, %v1081_v32  ;;  %1516 = vmatmul.msk.f32.gmra.mxu3 %vm933_vm5, %v682_v54 }
 0x1f3   : > { %1277 = vmatmul.f32.gmra.mxu2 %v1582_v55 }
 0x1f4   : > { %1583 = vtanh.f32 %v1158_v34 }
 0x1f7   : > { %v1083_v56 = vpop.f32.mrf.mxu1 }
 0x1f8   : > { %v1084_v11 = vadd.f32 %v1083_v56, %v873_v45 }
 0x1f9   : > { %v683_v57 = vpop.trf.xlu0 }
 0x1fa   : > { %v1584_v58 = vpop.eup %1583  ;;  %v1159_v59 = vadd.f32 %v2019_v44, %v1084_v11  ;;  %1517 = vmatmul.msk.f32.gmra.mxu3 %vm933_vm5, %v683_v57  ;;  %v2131_v11 = vpop.f32.mrf.mxu3 }
 0x1fb   : > { %1280 = vmatmul.f32.gmra.mxu2 %v1584_v58 }
 0x1fc   : > { %1585 = vtanh.f32 %v1159_v59 }
 0x1ff   : > { %v1086_v30 = vpop.f32.mrf.mxu1 }
 0x200   : > { %v1087_v61 = vadd.f32 %v1086_v30, %v876_v16  ;;  %v900_v16 = vpop.f32.mrf.mxu0 }
 0x201   : > { %v684_v62 = vpop.trf.xlu0 }
 0x202   : > { %v1586_v0 = vpop.eup %1585  ;;  %v1160_v1 = vadd.f32 %v2019_v44, %v1087_v61  ;;  %1518 = vmatmul.msk.f32.gmra.mxu3 %vm933_vm5, %v684_v62 }
 0x203   : > { %1283 = vmatmul.f32.gmra.mxu2 %v1586_v0 }
 0x204   : > { %1587 = vtanh.f32 %v1160_v1 }
 0x207   : > { %v1089_v5 = vpop.f32.mrf.mxu1 }
 0x208   : > { %v1090_v7 = vadd.f32 %v1089_v5, %v879_v50  ;;  %v903_v55 = vpop.f32.mrf.mxu0  ;;  %v924_v5 = vpop.f32.mrf.mxu3 }
 0x209   : > { %v685_v8 = vpop.trf.xlu0 }
 0x20a   : > { %v1588_v10 = vpop.eup %1587  ;;  %v1161_v3 = vadd.f32 %v2019_v44, %v1090_v7  ;;  %1519 = vmatmul.msk.f32.gmra.mxu3 %vm933_vm5, %v685_v8 }
 0x20b   : > { %1286 = vmatmul.f32.gmra.mxu2 %v1588_v10 }
 0x20c   : > { %1589 = vtanh.f32 %v1161_v3 }
 0x20f   : > { %v1092_v12 = vpop.f32.mrf.mxu1 }
 0x210   : > { %v1093_v14 = vadd.f32 %v1092_v12, %v882_v60  ;;  %v906_v62 = vpop.f32.mrf.mxu0 }
 0x211   : > { %v686_v4 = vpop.trf.xlu0 }
 0x212   : > { %v1590_v15 = vpop.eup %1589  ;;  %v1162_v17 = vadd.f32 %v2019_v44, %v1093_v14  ;;  %1520 = vmatmul.msk.f32.gmra.mxu3 %vm933_vm5, %v686_v4 }
 0x213   : > { %1289 = vmatmul.f32.gmra.mxu2 %v1590_v15  ;;  %v927_v15 = vpop.f32.mrf.mxu3 }
 0x214   : > { %1591 = vtanh.f32 %v1162_v17 }
 0x217   : > { %v1095_v19 = vpop.f32.mrf.mxu1 }
 0x218   : > { %v1096_v21 = vadd.f32 %v1095_v19, %v885_v22  ;;  %v909_v3 = vpop.f32.mrf.mxu0 }
 0x21a   : > { %v1592_v25 = vpop.eup %1591  ;;  %v1163_v27 = vadd.f32 %v2019_v44, %v1096_v21 }
 0x21b   : > { %1292 = vmatmul.f32.gmra.mxu2 %v1592_v25 }
 0x21c   : > { %1593 = vtanh.f32 %v1163_v27 }
 0x21f   : > { %v1098_v9 = vpop.f32.mrf.mxu1 }
 0x220   : > { %v1099_v2 = vadd.f32 %v1098_v9, %v888_v13 }
 0x222   : > { %v1594_v28 = vpop.eup %1593  ;;  %v1164_v6 = vadd.f32 %v2019_v44, %v1099_v2 }
 0x223   : > { %1295 = vmatmul.f32.gmra.mxu2 %v1594_v28  ;;  %v930_v28 = vpop.f32.mrf.mxu3 }
 0x224   : > { %1595 = vtanh.f32 %v1164_v6 }
 0x226   : > { %v1248_v37 = vpop.f32.mrf.mxu2 }
 0x227   : > { %v1249_v18 = vadd.f32 %v2100_v33, %v1248_v37  ;;  %v1101_v29 = vpop.f32.mrf.mxu1 }
 0x228   : > { %v1102_v38 = vadd.f32 %v1101_v29, %v891_v23 }
 0x229   : > { %1344 = vst.msk [vmem:[%s2107_s18] sm:$0xff] %vm723_vm4, %v1249_v18 }
 0x22a   : > { %v1596_v39 = vpop.eup %1595  ;;  %v1165_v40 = vadd.f32 %v2019_v44, %v1102_v38 }
 0x22b   : > { %1298 = vmatmul.f32.gmra.mxu2 %v1596_v39 }
 0x22c   : > { %1597 = vtanh.f32 %v1165_v40 }
 0x22e   : > { %v1251_v42 = vpop.f32.mrf.mxu2 }
 0x22f   : > { %v1252_v43 = vadd.f32 %v2100_v33, %v1251_v42  ;;  %v1104_v36 = vpop.f32.mrf.mxu1 }
 0x230   : > { %v1105_v45 = vadd.f32 %v1104_v36, %v894_v35 }
 0x231   : > { %1345 = vst.msk [vmem:[%s2107_s18 + $0x8] sm:$0xff] %vm723_vm4, %v1252_v43 }
 0x232   : > { %v1598_v47 = vpop.eup %1597  ;;  %v1166_v48 = vadd.f32 %v2019_v44, %v1105_v45 }
 0x233   : > { %1301 = vmatmul.f32.gmra.mxu2 %v1598_v47 }
 0x234   : > { %1599 = vtanh.f32 %v1166_v48 }
 0x236   : > { %v1254_v49 = vpop.f32.mrf.mxu2 }
 0x237   : > { %v1255_v51 = vadd.f32 %v2100_v33, %v1254_v49  ;;  %v1107_v63 = vpop.f32.mrf.mxu1 }
 0x238   : > { %v1108_v52 = vadd.f32 %v1107_v63, %v897_v41 }
 0x239   : > { %1346 = vst.msk [vmem:[%s2107_s18 + $0x10] sm:$0xff] %vm723_vm4, %v1255_v51 }
 0x23a   : > { %v1600_v53 = vpop.eup %1599  ;;  %v1167_v20 = vadd.f32 %v2019_v44, %v1108_v52 }
 0x23b   : > { %1304 = vmatmul.f32.gmra.mxu2 %v1600_v53 }
 0x23c   : > { %1601 = vtanh.f32 %v1167_v20 }
 0x23e   : > { %v1257_v26 = vpop.f32.mrf.mxu2 }
 0x23f   : > { %v1258_v32 = vadd.f32 %v2100_v33, %v1257_v26  ;;  %v1110_v54 = vpop.f32.mrf.mxu1 }
 0x240   : > { %v1111_v50 = vadd.f32 %v1110_v54, %v900_v16 }
 0x241   : > { %1347 = vst.msk [vmem:[%s2107_s18 + $0x18] sm:$0xff] %vm723_vm4, %v1258_v32 }
 0x242   : > { %v1602_v34 = vpop.eup %1601  ;;  %v1168_v56 = vadd.f32 %v2019_v44, %v1111_v50 }
 0x243   : > { %1307 = vmatmul.f32.gmra.mxu2 %v1602_v34 }
 0x244   : > { %1603 = vtanh.f32 %v1168_v56 }
 0x246   : > { %v1260_v57 = vpop.f32.mrf.mxu2 }
 0x247   : > { %v1261_v58 = vadd.f32 %v2100_v33, %v1260_v57  ;;  %v1113_v59 = vpop.f32.mrf.mxu1 }
 0x248   : > { %v1114_v60 = vadd.f32 %v1113_v59, %v903_v55 }
 0x249   : > { %1348 = vst.msk [vmem:[%s2107_s18 + $0x20] sm:$0xff] %vm723_vm4, %v1261_v58 }
 0x24a   : > { %v1604_v30 = vpop.eup %1603  ;;  %v1169_v61 = vadd.f32 %v2019_v44, %v1114_v60 }
 0x24b   : > { %1310 = vmatmul.f32.gmra.mxu2 %v1604_v30 }
 0x24c   : > { %1605 = vtanh.f32 %v1169_v61 }
 0x24e   : > { %v1263_v0 = vpop.f32.mrf.mxu2 }
 0x24f   : > { %v1264_v1 = vadd.f32 %v2100_v33, %v1263_v0  ;;  %v1116_v22 = vpop.f32.mrf.mxu1 }
 0x250   : > { %v1117_v7 = vadd.f32 %v1116_v22, %v906_v62 }
 0x251   : > { %1349 = vst.msk [vmem:[%s2107_s18 + $0x28] sm:$0xff] %vm723_vm4, %v1264_v1 }
 0x252   : > { %v1606_v8 = vpop.eup %1605  ;;  %v1170_v10 = vadd.f32 %v2019_v44, %v1117_v7 }
 0x253   : > { %1313 = vmatmul.f32.vlgmr.msra.gmra.mxu3 %v1606_v8 }
 0x254   : > { %1607 = vtanh.f32 %v1170_v10 }
 0x256   : > { %v1266_v12 = vpop.f32.mrf.mxu2 }
 0x257   : > { %v1267_v13 = vadd.f32 %v2100_v33, %v1266_v12  ;;  %v1119_v14 = vpop.f32.mrf.mxu1 }
 0x258   : > { %v1120_v4 = vadd.f32 %v1119_v14, %v909_v3 }
 0x259   : > { %1350 = vst.msk [vmem:[%s2107_s18 + $0x30] sm:$0xff] %vm723_vm4, %v1267_v13 }
 0x25a   : > { %v1608_v17 = vpop.eup %1607  ;;  %v1171_v19 = vadd.f32 %v2019_v44, %v1120_v4 }
 0x25b   : > { %1316 = vmatmul.f32.gmra.mxu3 %v1608_v17 }
 0x25c   : > { %1609 = vtanh.f32 %v1171_v19 }
 0x25e   : > { %v1269_v21 = vpop.f32.mrf.mxu2 }
 0x25f   : > { %v1270_v23 = vadd.f32 %v2100_v33, %v1269_v21  ;;  %v1122_v25 = vpop.f32.mrf.mxu1 }
 0x260   : > { %v1123_v27 = vadd.f32 %v1122_v25, %v2110_v31 }
 0x261   : > { %1351 = vst.msk [vmem:[%s2107_s18 + $0x38] sm:$0xff] %vm723_vm4, %v1270_v23 }
 0x262   : > { %v1610_v9 = vpop.eup %1609  ;;  %v1172_v2 = vadd.f32 %v2019_v44, %v1123_v27 }
 0x263   : > { %1319 = vmatmul.f32.gmra.mxu3 %v1610_v9 }
 0x264   : > { %1611 = vtanh.f32 %v1172_v2 }
 0x266   : > { %v1272_v6 = vpop.f32.mrf.mxu2 }
 0x267   : > { %v1273_v35 = vadd.f32 %v2100_v33, %v1272_v6 }
 0x269   : > { %1352 = vst.msk [vmem:[%s2107_s18 + $0x40] sm:$0xff] %vm723_vm4, %v1273_v35 }
 0x26a   : > { %v1612_v37 = vpop.eup %1611 }
 0x26b   : > { %1322 = vmatmul.f32.gmra.mxu3 %v1612_v37 }
 0x26d   : > { %v1125_v18 = vpop.f32.mrf.mxu3 }
 0x26e   : > { %v1126_v29 = vadd.f32 %v1125_v18, %v2118_v46  ;;  %v1275_v31 = vpop.f32.mrf.mxu2 }
 0x26f   : > { %v1276_v38 = vadd.f32 %v2100_v33, %v1275_v31 }
 0x270   : > { %v1173_v39 = vadd.f32 %v2019_v44, %v1126_v29 }
 0x271   : > { %1353 = vst.msk [vmem:[%s2107_s18 + $0x48] sm:$0xff] %vm723_vm4, %v1276_v38 }
 0x272   : > { %1613 = vtanh.f32 %v1173_v39 }
 0x275   : > { %v1128_v40 = vpop.f32.mrf.mxu3 }
 0x276   : > { %v1129_v41 = vadd.f32 %v1128_v40, %v2125_v24  ;;  %v1278_v42 = vpop.f32.mrf.mxu2 }
 0x277   : > { %v1279_v43 = vadd.f32 %v2100_v33, %v1278_v42 }
 0x278   : > { %v1614_v36 = vpop.eup %1613  ;;  %v1174_v45 = vadd.f32 %v2019_v44, %v1129_v41 }
 0x279   : > { %1354 = vst.msk [vmem:[%s2107_s18 + $0x50] sm:$0xff] %vm723_vm4, %v1279_v43  ;;  %1325 = vmatmul.f32.gmra.mxu3 %v1614_v36 }
 0x27a   : > { %1615 = vtanh.f32 %v1174_v45 }
 0x27d   : > { %v1131_v46 = vpop.f32.mrf.mxu3 }
 0x27e   : > { %v1132_v47 = vadd.f32 %v1131_v46, %v2131_v11  ;;  %v1281_v48 = vpop.f32.mrf.mxu2 }
 0x27f   : > { %v1282_v49 = vadd.f32 %v2100_v33, %v1281_v48 }
 0x280   : > { %v1616_v51 = vpop.eup %1615  ;;  %v1175_v63 = vadd.f32 %v2019_v44, %v1132_v47 }
 0x281   : > { %1355 = vst.msk [vmem:[%s2107_s18 + $0x58] sm:$0xff] %vm723_vm4, %v1282_v49  ;;  %1328 = vmatmul.f32.gmra.mxu3 %v1616_v51 }
 0x282   : > { %1617 = vtanh.f32 %v1175_v63 }
 0x285   : > { %v1134_v16 = vpop.f32.mrf.mxu3 }
 0x286   : > { %v1135_v52 = vadd.f32 %v1134_v16, %v924_v5  ;;  %v1284_v53 = vpop.f32.mrf.mxu2 }
 0x287   : > { %v1285_v20 = vadd.f32 %v2100_v33, %v1284_v53 }
 0x288   : > { %v1618_v24 = vpop.eup %1617  ;;  %v1176_v26 = vadd.f32 %v2019_v44, %v1135_v52 }
 0x289   : > { %1356 = vst.msk [vmem:[%s2107_s18 + $0x60] sm:$0xff] %vm723_vm4, %v1285_v20  ;;  %1331 = vmatmul.f32.gmra.mxu3 %v1618_v24 }
 0x28a   : > { %1619 = vtanh.f32 %v1176_v26 }
 0x28d   : > { %v1137_v32 = vpop.f32.mrf.mxu3 }
 0x28e   : > { %v1138_v54 = vadd.f32 %v1137_v32, %v927_v15  ;;  %v1287_v50 = vpop.f32.mrf.mxu2 }
 0x28f   : > { %v1288_v55 = vadd.f32 %v2100_v33, %v1287_v50 }
 0x290   : > { %v1620_v34 = vpop.eup %1619  ;;  %v1177_v56 = vadd.f32 %v2019_v44, %v1138_v54 }
 0x291   : > { %1357 = vst.msk [vmem:[%s2107_s18 + $0x68] sm:$0xff] %vm723_vm4, %v1288_v55  ;;  %1334 = vmatmul.f32.gmra.mxu3 %v1620_v34 }
 0x292   : > { %1621 = vtanh.f32 %v1177_v56 }
 0x295   : > { %v1140_v11 = vpop.f32.mrf.mxu3 }
 0x296   : > { %v1141_v57 = vadd.f32 %v1140_v11, %v930_v28  ;;  %v1290_v58 = vpop.f32.mrf.mxu2 }
 0x297   : > { %v1291_v59 = vadd.f32 %v2100_v33, %v1290_v58 }
 0x298   : > { %v1622_v60 = vpop.eup %1621  ;;  %v1178_v30 = vadd.f32 %v2019_v44, %v1141_v57 }
 0x299   : > { %1358 = vst.msk [vmem:[%s2107_s18 + $0x70] sm:$0xff] %vm723_vm4, %v1291_v59  ;;  %1337 = vmatmul.f32.gmra.mxu3 %v1622_v60 }
 0x29a   : > { %1623 = vtanh.f32 %v1178_v30 }
 0x29e   : > { %v1293_v61 = vpop.f32.mrf.mxu2 }
 0x29f   : > { %v1294_v62 = vadd.f32 %v2100_v33, %v1293_v61 }
 0x2a0   : > { %v1624_v0 = vpop.eup %1623 }
 0x2a1   : > { %1359 = vst.msk [vmem:[%s2107_s18 + $0x78] sm:$0xff] %vm723_vm4, %v1294_v62  ;;  %1340 = vmatmul.f32.gmra.mxu3 %v1624_v0 }
 0x2a6   : > { %v1296_v1 = vpop.f32.mrf.mxu2 }
 0x2a7   : > { %v1297_v22 = vadd.f32 %v2100_v33, %v1296_v1 }
 0x2a9   : > { %1360 = vst.msk [vmem:[%s2107_s18 + $0x80] sm:$0xff] %vm723_vm4, %v1297_v22 }
 0x2ae   : > { %v1299_v44 = vpop.f32.mrf.mxu2 }
 0x2af   : > { %v1300_v5 = vadd.f32 %v2100_v33, %v1299_v44 }
 0x2b1   : > { %1361 = vst.msk [vmem:[%s2107_s18 + $0x88] sm:$0xff] %vm723_vm4, %v1300_v5 }
 0x2b6   : > { %v1302_v7 = vpop.f32.mrf.mxu2 }
 0x2b7   : > { %v1303_v8 = vadd.f32 %v2100_v33, %v1302_v7 }
 0x2b9   : > { %1362 = vst.msk [vmem:[%s2107_s18 + $0x90] sm:$0xff] %vm723_vm4, %v1303_v8 }
 0x2be   : > { %v1305_v10 = vpop.f32.mrf.mxu2 }
 0x2bf   : > { %v1306_v3 = vadd.f32 %v2100_v33, %v1305_v10 }
 0x2c1   : > { %1363 = vst.msk [vmem:[%s2107_s18 + $0x98] sm:$0xff] %vm723_vm4, %v1306_v3 }
 0x2c6   : > { %v1308_v12 = vpop.f32.mrf.mxu2 }
 0x2c7   : > { %v1309_v13 = vadd.f32 %v2100_v33, %v1308_v12 }
 0x2c9   : > { %1364 = vst.msk [vmem:[%s2107_s18 + $0xa0] sm:$0xff] %vm723_vm4, %v1309_v13 }
 0x2ce   : > { %v1311_v14 = vpop.f32.mrf.mxu2 }
 0x2cf   : > { %v1312_v4 = vadd.f32 %v2100_v33, %v1311_v14 }
 0x2d1   : > { %1365 = vst.msk [vmem:[%s2107_s18 + $0xa8] sm:$0xff] %vm723_vm4, %v1312_v4 }
 0x2d6   : > { %v1314_v15 = vpop.f32.mrf.mxu3 }
 0x2d7   : > { %v1315_v17 = vadd.f32 %v2100_v33, %v1314_v15 }
 0x2d9   : > { %1366 = vst.msk [vmem:[%s2107_s18 + $0xb0] sm:$0xff] %vm723_vm4, %v1315_v17 }
 0x2de   : > { %v1317_v19 = vpop.f32.mrf.mxu3 }
 0x2df   : > { %v1318_v21 = vadd.f32 %v2100_v33, %v1317_v19 }
 0x2e1   : > { %1367 = vst.msk [vmem:[%s2107_s18 + $0xb8] sm:$0xff] %vm723_vm4, %v1318_v21 }
 0x2e6   : > { %v1320_v23 = vpop.f32.mrf.mxu3 }
 0x2e7   : > { %v1321_v25 = vadd.f32 %v2100_v33, %v1320_v23 }
 0x2e9   : > { %1368 = vst.msk [vmem:[%s2107_s18 + $0xc0] sm:$0xff] %vm723_vm4, %v1321_v25 }
 0x2ee   : > { %v1323_v27 = vpop.f32.mrf.mxu3 }
 0x2ef   : > { %v1324_v9 = vadd.f32 %v2100_v33, %v1323_v27 }
 0x2f1   : > { %1369 = vst.msk [vmem:[%s2107_s18 + $0xc8] sm:$0xff] %vm723_vm4, %v1324_v9 }
 0x2fc   : > { %v1326_v2 = vpop.f32.mrf.mxu3 }
 0x2fd   : > { %v1327_v28 = vadd.f32 %v2100_v33, %v1326_v2 }
 0x2ff   : > { %1370 = vst.msk [vmem:[%s2107_s18 + $0xd0] sm:$0xff] %vm723_vm4, %v1327_v28 }
 0x304   : > { %v1329_v6 = vpop.f32.mrf.mxu3 }
 0x305   : > { %v1330_v35 = vadd.f32 %v2100_v33, %v1329_v6 }
 0x307   : > { %1371 = vst.msk [vmem:[%s2107_s18 + $0xd8] sm:$0xff] %vm723_vm4, %v1330_v35 }
 0x30c   : > { %v1332_v37 = vpop.f32.mrf.mxu3 }
 0x30d   : > { %v1333_v18 = vadd.f32 %v2100_v33, %v1332_v37 }
 0x30f   : > { %1372 = vst.msk [vmem:[%s2107_s18 + $0xe0] sm:$0xff] %vm723_vm4, %v1333_v18 }
 0x314   : > { %v1335_v29 = vpop.f32.mrf.mxu3 }
 0x315   : > { %v1336_v31 = vadd.f32 %v2100_v33, %v1335_v29 }
 0x317   : > { %1373 = vst.msk [vmem:[%s2107_s18 + $0xe8] sm:$0xff] %vm723_vm4, %v1336_v31 }
 0x31c   : > { %v1338_v38 = vpop.f32.mrf.mxu3 }
 0x31d   : > { %v1339_v39 = vadd.f32 %v2100_v33, %v1338_v38 }
 0x31f   : > { %1374 = vst.msk [vmem:[%s2107_s18 + $0xf0] sm:$0xff] %vm723_vm4, %v1339_v39 }
 0x324   : > { %v1341_v40 = vpop.f32.mrf.mxu3 }
 0x325   : > { %v1342_v41 = vadd.f32 %v2100_v33, %v1341_v40 }
 0x327   : > { %1375 = vst.msk [vmem:[%s2107_s18 + $0xf8] sm:$0xff] %vm723_vm4, %v1342_v41 }
 0x328 PF: > { %s17_s24 = sadd.s32 1, %s1631_s24  }
 0x329   : > { %p14_p5 = scmp.ge.s32.totalorder %s17_s24, 4  }
 0x32b   :  { %16 = sbr.rel (!%p14_p5) target bundleno = 1 (0x1), region = 81 }

</bundles_post_ra>
